<compile_context>
chip_gen: v7x
topology: tpu7x:2x2x1
jax: 0.10.0
libtpu: 0.0.40
codegen_flags: <defaults>
</compile_context>

<pallas_src>
import numpy as np
import jax
import jax.numpy as jnp
from jax.experimental import pallas as pl
from jax.experimental.pallas import tpu as pltpu

LOG_SCALE_MIN = -7.0                      # hparams.log_scale_min
HALF_LOG_2PI = 0.5 * float(np.log(2.0 * np.pi))


def _make_kernel(nr_mix, B, C, T, tT):
    """Build the tile kernel, statically specialized on (nr_mix, shapes)."""
    single = (C == 2)
    M = nr_mix

    def kernel(lens_ref, yhat_ref, y_ref, loss_out_ref, mask_out_ref):
        # yhat_ref: (B, C, tT) native layout; y_ref: (B, tT); lens_ref: (B,) SMEM
        t0 = pl.program_id(0) * tT
        x = yhat_ref[...].astype(jnp.float32)          # (B, C, tT)
        yv = y_ref[...].astype(jnp.float32)            # (B, tT)

        if single:
            # single gaussian: no mixture logits / softmax at all
            means = x[:, 0, :]                                        # (B, tT)
            log_scales = jnp.maximum(x[:, 1, :], LOG_SCALE_MIN)
            centered = yv - means
            log_prob = (-0.5 * centered * centered * jnp.exp(-2.0 * log_scales)
                        - log_scales - HALF_LOG_2PI)
            losses = -log_prob                                        # (B, tT)
        else:
            logit = x[:, 0:M, :]                                      # (B, M, tT)
            means = x[:, M:2 * M, :]
            log_scales = jnp.maximum(x[:, 2 * M:3 * M, :], LOG_SCALE_MIN)
            centered = yv[:, None, :] - means
            log_prob = (-0.5 * centered * centered * jnp.exp(-2.0 * log_scales)
                        - log_scales - HALF_LOG_2PI)                  # (B, M, tT)
            # fused: -logsumexp(log_prob + log_softmax(logit), mix)
            #      = -(logsumexp(log_prob + logit) - logsumexp(logit))
            a = log_prob + logit
            m_a = jnp.max(a, axis=1, keepdims=True)
            lse_a = m_a[:, 0, :] + jnp.log(jnp.sum(jnp.exp(a - m_a), axis=1))
            m_l = jnp.max(logit, axis=1, keepdims=True)
            lse_l = m_l[:, 0, :] + jnp.log(jnp.sum(jnp.exp(logit - m_l), axis=1))
            losses = lse_l - lse_a                                    # (B, tT)

        # in-kernel sequence mask for this time tile (also zeroes any padded
        # lanes of a partial last block, since min(length, T) <= T).
        iota = jax.lax.broadcasted_iota(jnp.int32, (1, tT), 1) + t0   # (1, tT)
        mask = jnp.concatenate(
            [(iota < jnp.minimum(lens_ref[b], T)).astype(jnp.float32)
             for b in range(B)],
            axis=0)                                                   # (B, tT)

        loss_sum = jnp.sum(jnp.where(mask > 0.0, losses, 0.0))
        mask_sum = jnp.sum(mask)

        # lane-dense per-tile partial outputs (reduced in the wrapper)
        loss_out_ref[...] = jnp.full((1, 8, 128), loss_sum, jnp.float32)
        mask_out_ref[...] = jnp.full((1, 8, 128), mask_sum, jnp.float32)

    return kernel


def mixture_gaussian_loss(y_hat, y, lengths, max_len=None, tile_t=2048):
    """Equivalent of MixtureGaussianLoss()(input=y_hat, target=y, lengths=lengths)."""
    B, C, T = y_hat.shape
    if max_len is not None and max_len != T:
        raise ValueError("max_len must equal T (target time dimension)")
    if C == 2:
        nr_mix = 1
    else:
        assert C % 3 == 0
        nr_mix = C // 3

    y2 = jnp.reshape(y, (B, T))                 # drop trailing singleton (free)
    lens = lengths.astype(jnp.int32)

    # choose a lane-axis tile (multiple of 128 when T allows tiling)
    tile_t = max(128, (int(tile_t) // 128) * 128)
    if T % 128 == 0:
        tt = min(tile_t, T)
        # keep the double-buffered y_hat tile modest (v7x 64 MiB VMEM budget)
        while tt > 128 and B * C * tt * 4 * 2 > (6 << 20):
            tt //= 2
    else:
        tt = T                                   # full-extent block (e.g. T < 128)
    grid_t = pl.cdiv(T, tt)

    kernel = _make_kernel(nr_mix, B, C, T, tt)

    loss_part, mask_part = pl.pallas_call(
        kernel,
        out_shape=(jax.ShapeDtypeStruct((grid_t, 8, 128), jnp.float32),
                   jax.ShapeDtypeStruct((grid_t, 8, 128), jnp.float32)),
        grid_spec=pltpu.PrefetchScalarGridSpec(
            num_scalar_prefetch=1,               # lengths -> SMEM
            grid=(grid_t,),
            in_specs=[
                pl.BlockSpec((B, C, tt), lambda t, L: (0, 0, t)),   # y_hat native
                pl.BlockSpec((B, tt), lambda t, L: (0, t)),         # y
            ],
            out_specs=[
                pl.BlockSpec((1, 8, 128), lambda t, L: (t, 0, 0)),
                pl.BlockSpec((1, 8, 128), lambda t, L: (t, 0, 0)),
            ],
        ),
        compiler_params=pltpu.CompilerParams(
            dimension_semantics=("parallel",)),
    )(lens, y_hat, y2)

    loss_sum = jnp.sum(loss_part[:, 0, 0])
    mask_sum = jnp.sum(mask_part[:, 0, 0])
    return loss_sum / mask_sum


def _reference_loss(y_hat, y, lengths, log_scale_min=LOG_SCALE_MIN):
    """Pure-JAX replica of the PyTorch module for verification."""
    B, C, T = y_hat.shape
    nr_mix = 1 if C == 2 else C // 3
    yh = jnp.transpose(y_hat, (0, 2, 1))                 # (B, T, C)
    if C == 2:
        logit = None
        means = yh[:, :, 0:1]
        log_scales = jnp.maximum(yh[:, :, 1:2], log_scale_min)
    else:
        logit = yh[:, :, :nr_mix]
        means = yh[:, :, nr_mix:2 * nr_mix]
        log_scales = jnp.maximum(yh[:, :, 2 * nr_mix:3 * nr_mix], log_scale_min)
    yb = jnp.broadcast_to(y, means.shape)
    centered = yb - means
    log_probs = (-0.5 * centered ** 2 * jnp.exp(-2.0 * log_scales)
                 - log_scales - HALF_LOG_2PI)
    if nr_mix > 1:
        log_probs = log_probs + jax.nn.log_softmax(logit, axis=-1)
        losses = -jax.scipy.special.logsumexp(log_probs, axis=-1, keepdims=True)
    else:
        losses = -log_probs
    mask = (jnp.arange(T)[None, :] < lengths[:, None]).astype(jnp.float32)[..., None]
    mask_ = jnp.broadcast_to(mask, losses.shape)
    return jnp.sum(losses * mask_) / jnp.sum(mask_)


if __name__ == "__main__":
    key = jax.random.PRNGKey(0)

    # --- main case: mixture of 2 gaussians, small shapes ---
    B, T, nr_mix = 2, 16, 2
    C = 3 * nr_mix
    k1, k2, k3, k4 = jax.random.split(key, 4)
    y_hat = jax.random.normal(k1, (B, C, T), dtype=jnp.float32)
    y = jax.random.uniform(k2, (B, T, 1), dtype=jnp.float32, minval=-1.0, maxval=1.0)
    lengths = jnp.array([16, 11], dtype=jnp.int32)

    loss = jax.block_until_ready(mixture_gaussian_loss(y_hat, y, lengths))
    ref = jax.block_until_ready(_reference_loss(y_hat, y, lengths))
    np.testing.assert_allclose(np.asarray(loss), np.asarray(ref),
                               rtol=1e-5, atol=1e-5)

    # --- single-gaussian (C == 2) specialization ---
    y_hat2 = jax.random.normal(k3, (B, 2, T), dtype=jnp.float32)
    lengths2 = jnp.array([16, 9], dtype=jnp.int32)
    loss2 = jax.block_until_ready(mixture_gaussian_loss(y_hat2, y, lengths2))
    ref2 = jax.block_until_ready(_reference_loss(y_hat2, y, lengths2))
    np.testing.assert_allclose(np.asarray(loss2), np.asarray(ref2),
                               rtol=1e-5, atol=1e-5)

    # --- multi-tile grid (T multiple of 128, small tile to force 2 grid steps) ---
    T3 = 256
    ka, kb = jax.random.split(k4)
    y_hat3 = jax.random.normal(ka, (B, C, T3), dtype=jnp.float32)
    y3 = jax.random.uniform(kb, (B, T3, 1), dtype=jnp.float32, minval=-1.0, maxval=1.0)
    lengths3 = jnp.array([200, 96], dtype=jnp.int32)
    loss3 = jax.block_until_ready(
        mixture_gaussian_loss(y_hat3, y3, lengths3, tile_t=128))
    ref3 = jax.block_until_ready(_reference_loss(y_hat3, y3, lengths3))
    np.testing.assert_allclose(np.asarray(loss3), np.asarray(ref3),
                               rtol=1e-5, atol=1e-5)

    print("KERNEL_OK")
</pallas_src>

<mosaic_0001>
module attributes {stable_mosaic.version = 11 : i64} {
  func.func @kernel(%arg0: i32, %arg1: memref<2xi32, #tpu.memory_space<smem>>, %arg2: memref<2x6x16xf32, #tpu.memory_space<vmem>>, %arg3: memref<2x16xf32, #tpu.memory_space<vmem>>, %arg4: memref<1x8x128xf32, #tpu.memory_space<vmem>>, %arg5: memref<1x8x128xf32, #tpu.memory_space<vmem>>) attributes {dimension_semantics = [#tpu.dimension_semantics<parallel>], iteration_bounds = array<i64: 1>, scalar_prefetch = 1 : i64, scratch_operands = 0 : i64, tpu.core_type = #tpu.core_type<tc>, window_params = [{transform_indices = @transform_0, window_bounds = array<i64: 2, 6, 16>}, {transform_indices = @transform_1, window_bounds = array<i64: 2, 16>}, {transform_indices = @transform_2, window_bounds = array<i64: 1, 8, 128>}, {transform_indices = @transform_3, window_bounds = array<i64: 1, 8, 128>}]} {
    %c16_i32 = arith.constant 16 : i32
    %0 = arith.muli %arg0, %c16_i32 : i32
    %c0 = arith.constant 0 : index
    %c0_0 = arith.constant 0 : index
    %c0_1 = arith.constant 0 : index
    %1 = vector.load %arg2[%c0, %c0_0, %c0_1] : memref<2x6x16xf32, #tpu.memory_space<vmem>>, vector<2x6x16xf32>
    %c0_2 = arith.constant 0 : index
    %c0_3 = arith.constant 0 : index
    %2 = vector.load %arg3[%c0_2, %c0_3] : memref<2x16xf32, #tpu.memory_space<vmem>>, vector<2x16xf32>
    %3 = vector.extract_strided_slice %1 {offsets = [0, 0, 0], sizes = [2, 2, 16], strides = [1, 1, 1]} : vector<2x6x16xf32> to vector<2x2x16xf32>
    %4 = vector.extract_strided_slice %1 {offsets = [0, 2, 0], sizes = [2, 2, 16], strides = [1, 1, 1]} : vector<2x6x16xf32> to vector<2x2x16xf32>
    %5 = vector.extract_strided_slice %1 {offsets = [0, 4, 0], sizes = [2, 2, 16], strides = [1, 1, 1]} : vector<2x6x16xf32> to vector<2x2x16xf32>
    %cst = arith.constant -7.000000e+00 : f32
    %6 = vector.broadcast %cst : f32 to vector<2x2x16xf32>
    %7 = arith.maximumf %5, %6 : vector<2x2x16xf32>
    %8 = vector.shape_cast %2 : vector<2x16xf32> to vector<2x1x16xf32>
    %9 = vector.broadcast %8 : vector<2x1x16xf32> to vector<2x2x16xf32>
    %10 = arith.subf %9, %4 : vector<2x2x16xf32>
    %cst_4 = arith.constant -5.000000e-01 : f32
    %11 = vector.broadcast %cst_4 : f32 to vector<2x2x16xf32>
    %12 = arith.mulf %11, %10 : vector<2x2x16xf32>
    %13 = arith.mulf %12, %10 : vector<2x2x16xf32>
    %cst_5 = arith.constant -2.000000e+00 : f32
    %14 = vector.broadcast %cst_5 : f32 to vector<2x2x16xf32>
    %15 = arith.mulf %14, %7 : vector<2x2x16xf32>
    %16 = math.exp %15 : vector<2x2x16xf32>
    %17 = arith.mulf %13, %16 : vector<2x2x16xf32>
    %18 = arith.subf %17, %7 : vector<2x2x16xf32>
    %cst_6 = arith.constant 0.918938517 : f32
    %19 = vector.broadcast %cst_6 : f32 to vector<2x2x16xf32>
    %20 = arith.subf %18, %19 : vector<2x2x16xf32>
    %21 = arith.addf %20, %3 : vector<2x2x16xf32>
    %cst_7 = arith.constant dense<0xFF800000> : vector<2x16xf32>
    %22 = vector.multi_reduction <maximumf>, %21, %cst_7 [1] : vector<2x2x16xf32> to vector<2x16xf32>
    %23 = vector.shape_cast %22 : vector<2x16xf32> to vector<2x1x16xf32>
    %24 = vector.shape_cast %23 : vector<2x1x16xf32> to vector<2x16xf32>
    %25 = vector.broadcast %23 : vector<2x1x16xf32> to vector<2x2x16xf32>
    %26 = arith.subf %21, %25 : vector<2x2x16xf32>
    %27 = math.exp %26 : vector<2x2x16xf32>
    %cst_8 = arith.constant dense<0.000000e+00> : vector<2x16xf32>
    %28 = vector.multi_reduction <add>, %27, %cst_8 [1] : vector<2x2x16xf32> to vector<2x16xf32>
    %29 = math.log %28 : vector<2x16xf32>
    %30 = arith.addf %24, %29 : vector<2x16xf32>
    %cst_9 = arith.constant dense<0xFF800000> : vector<2x16xf32>
    %31 = vector.multi_reduction <maximumf>, %3, %cst_9 [1] : vector<2x2x16xf32> to vector<2x16xf32>
    %32 = vector.shape_cast %31 : vector<2x16xf32> to vector<2x1x16xf32>
    %33 = vector.shape_cast %32 : vector<2x1x16xf32> to vector<2x16xf32>
    %34 = vector.broadcast %32 : vector<2x1x16xf32> to vector<2x2x16xf32>
    %35 = arith.subf %3, %34 : vector<2x2x16xf32>
    %36 = math.exp %35 : vector<2x2x16xf32>
    %cst_10 = arith.constant dense<0.000000e+00> : vector<2x16xf32>
    %37 = vector.multi_reduction <add>, %36, %cst_10 [1] : vector<2x2x16xf32> to vector<2x16xf32>
    %38 = math.log %37 : vector<2x16xf32>
    %39 = arith.addf %33, %38 : vector<2x16xf32>
    %40 = arith.subf %39, %30 : vector<2x16xf32>
    %41 = tpu.iota {dimensions = array<i32: 1>} : vector<1x16xi32>
    %42 = vector.broadcast %0 : i32 to vector<1x16xi32>
    %43 = arith.addi %41, %42 : vector<1x16xi32>
    %c0_11 = arith.constant 0 : index
    %44 = memref.load %arg1[%c0_11] : memref<2xi32, #tpu.memory_space<smem>>
    %c16_i32_12 = arith.constant 16 : i32
    %45 = arith.minsi %44, %c16_i32_12 : i32
    %46 = vector.broadcast %45 : i32 to vector<1x16xi32>
    %47 = arith.cmpi slt, %43, %46 : vector<1x16xi32>
    %48 = arith.extui %47 : vector<1x16xi1> to vector<1x16xi32>
    %49 = arith.sitofp %48 : vector<1x16xi32> to vector<1x16xf32>
    %c1 = arith.constant 1 : index
    %50 = memref.load %arg1[%c1] : memref<2xi32, #tpu.memory_space<smem>>
    %c16_i32_13 = arith.constant 16 : i32
    %51 = arith.minsi %50, %c16_i32_13 : i32
    %52 = vector.broadcast %51 : i32 to vector<1x16xi32>
    %53 = arith.cmpi slt, %43, %52 : vector<1x16xi32>
    %54 = arith.extui %53 : vector<1x16xi1> to vector<1x16xi32>
    %55 = arith.sitofp %54 : vector<1x16xi32> to vector<1x16xf32>
    %56 = tpu.concatenate %49, %55 in 0 : vector<1x16xf32>, vector<1x16xf32> -> vector<2x16xf32>
    %cst_14 = arith.constant 0.000000e+00 : f32
    %57 = vector.broadcast %cst_14 : f32 to vector<2x16xf32>
    %58 = arith.cmpf ogt, %56, %57 : vector<2x16xf32>
    %cst_15 = arith.constant 0.000000e+00 : f32
    %59 = vector.broadcast %cst_15 : f32 to vector<2x16xf32>
    %60 = arith.select %58, %40, %59 : vector<2x16xi1>, vector<2x16xf32>
    %61 = vector.shape_cast %60 : vector<2x16xf32> to vector<1x2x16xf32>
    %cst_16 = arith.constant dense<0.000000e+00> : vector<1xf32>
    %62 = vector.multi_reduction <add>, %61, %cst_16 [1, 2] : vector<1x2x16xf32> to vector<1xf32>
    %63 = vector.shape_cast %62 : vector<1xf32> to vector<1x1x1xf32>
    %64 = vector.extract %63[0, 0, 0] : f32 from vector<1x1x1xf32>
    %65 = vector.shape_cast %56 : vector<2x16xf32> to vector<1x2x16xf32>
    %cst_17 = arith.constant dense<0.000000e+00> : vector<1xf32>
    %66 = vector.multi_reduction <add>, %65, %cst_17 [1, 2] : vector<1x2x16xf32> to vector<1xf32>
    %67 = vector.shape_cast %66 : vector<1xf32> to vector<1x1x1xf32>
    %68 = vector.extract %67[0, 0, 0] : f32 from vector<1x1x1xf32>
    %69 = vector.broadcast %64 : f32 to vector<1x8x128xf32>
    %c0_18 = arith.constant 0 : index
    %c0_19 = arith.constant 0 : index
    %c0_20 = arith.constant 0 : index
    %70 = vector.load %arg4[%c0_18, %c0_19, %c0_20] : memref<1x8x128xf32, #tpu.memory_space<vmem>>, vector<1x8x128xf32>
    tpu.vector_store %arg4[%c0_18, %c0_19, %c0_20], %69 {strides = array<i32>} : memref<1x8x128xf32, #tpu.memory_space<vmem>>, vector<1x8x128xf32>,
    %71 = vector.broadcast %68 : f32 to vector<1x8x128xf32>
    %c0_21 = arith.constant 0 : index
    %c0_22 = arith.constant 0 : index
    %c0_23 = arith.constant 0 : index
    %72 = vector.load %arg5[%c0_21, %c0_22, %c0_23] : memref<1x8x128xf32, #tpu.memory_space<vmem>>, vector<1x8x128xf32>
    tpu.vector_store %arg5[%c0_21, %c0_22, %c0_23], %71 {strides = array<i32>} : memref<1x8x128xf32, #tpu.memory_space<vmem>>, vector<1x8x128xf32>,
    return
  }
  func.func @transform_0(%arg0: i32, %arg1: memref<2xi32, #tpu.memory_space<smem>>) -> (i32, i32, i32) {
    %c0_i32 = arith.constant 0 : i32
    %c0_i32_0 = arith.constant 0 : i32
    %c0_i32_1 = arith.constant 0 : i32
    return %c0_i32, %c0_i32_0, %arg0 : i32, i32, i32
  }
  func.func @transform_1(%arg0: i32, %arg1: memref<2xi32, #tpu.memory_space<smem>>) -> (i32, i32) {
    %c0_i32 = arith.constant 0 : i32
    %c0_i32_0 = arith.constant 0 : i32
    return %c0_i32, %arg0 : i32, i32
  }
  func.func @transform_2(%arg0: i32, %arg1: memref<2xi32, #tpu.memory_space<smem>>) -> (i32, i32, i32) {
    %c0_i32 = arith.constant 0 : i32
    %c0_i32_0 = arith.constant 0 : i32
    %c0_i32_1 = arith.constant 0 : i32
    return %arg0, %c0_i32, %c0_i32_0 : i32, i32, i32
  }
  func.func @transform_3(%arg0: i32, %arg1: memref<2xi32, #tpu.memory_space<smem>>) -> (i32, i32, i32) {
    %c0_i32 = arith.constant 0 : i32
    %c0_i32_0 = arith.constant 0 : i32
    %c0_i32_1 = arith.constant 0 : i32
    return %arg0, %c0_i32, %c0_i32_0 : i32, i32, i32
  }
}

</mosaic_0001>

<bundles_post_ra>
// kernel: tpu_custom_call.1
= control target key start
LH: loop header
LB: loop body
LE: loop exit
PB: predicated region body
PF: predicated region fallthrough
CT: control target
= control target key end

     0   :  { %s468_s0 = inlined_call_operand.vmem [shape: s32[2], index: 0, kind: input, shape index: {}]   ;;  %s469_s1 = inlined_call_operand.vmem [shape: f32[2,6,16], index: 1, kind: input, shape index: {}]   ;;  %s470_s2 = inlined_call_operand.vmem [shape: f32[2,16], index: 2, kind: input, shape index: {}]   ;;  %s471_s3 = inlined_call_operand.hbm [shape: f32[1,8,128], index: 3, kind: output, shape index: {0}]   ;;  %s472_s4 = inlined_call_operand.hbm [shape: f32[1,8,128], index: 4, kind: output, shape index: {1}]  }
   0x1   :  { %s10_s17 = sshll.u32 %s468_s0, 4  ;;  %s11_s17 = int_to_ptr.vmem [resolvable:$true] %s10_s17 }
   0x2   :  { %s303_s18 = scalar_lea.vmem %s11_s17, 16  ;;  %p308_p1 = scmp.lt.s32.totalorder %s11_s17, %s11_s17 }
   0x3   :  { %p304_p0 = scmp.ne.s32.totalorder %s11_s17, %s303_s18  ;;  %p309_p2 = scmp.lt.s32.totalorder %s303_s18, %s303_s18 }
   0x5   :  { %p310_p3 = por %p309_p2, %p308_p1 }
   0x7   :  { %p311_p4 = pnand %p310_p3, %p304_p0 }
   0x9   :  { %314 = shalt.err (!%p311_p4)  }
   0xa   :  { %s365_s19 = smov [#allocation3]  }
   0xb   :  { %13 = dma.vmem_to_smem %s11_s17, 16, %s365_s19, [#allocation2] }
   0xc   :  { %359 = dma.done.wait [#allocation2], 16 }
   0xd   :  { %360 = vsyncadd [#allocation2], 4294967280 }
   0xe   :  { %15 = sfence }
   0xf   :  { %16 = vsyncpa [#allocation5], 0  ;;  %v401_v0 = vld [vmem:[%s469_s1] sm:$0x3f]  ;;  %v406_v1 = vld [vmem:[%s469_s1 + $0x8] sm:$0x3f]  ;;  %v40_v2 = vlaneseq }
  0x10   :  { %v268_v3 = vld.sshfl [vmem:[%s470_s2] sm:$0x11 pattern:$0x75316420]  ;;  %v26_v4 = vmax.f32 %v401_v0, -7.0  ;;  %v27_v5 = vmax.f32 %v406_v1, -7.0 }
  0x11   :  { %v366_v6 = vmov 1966171168   ;;  %v41_v8 = vshrl.u32 %v40_v2, 7  ;;  %s193_s25 = sld [smem:[#allocation3]]  ;;  %v36_v9 = vcombine.high %v268_v3, %v268_v3  ;;  %s272_s26 = sld [smem:[#allocation3 + $0x1]]  ;;  %vm126_vm0 = vcmask 123904  }
  0x12   :  { %v38_v7 = vunpack.c.l.s4 %v366_v6  ;;  %v67_v11 = vmul.f32 -2.0, %v26_v4  ;;  %v68_v12 = vmul.f32 -2.0, %v27_v5 }
  0x13   :  { %v53_v13 = vsub.s32 0, %v41_v8 }
  0x14   :  { %v39_v10 = vunpack.c.0.s8 %v38_v7 }
  0x15   :  { %17 = vsyncpa [#allocation7], 0  ;;  %v69_v15 = vmul.f32 1.442695, %v67_v11  ;;  %v71_v16 = vmul.f32 1.442695, %v68_v12 }
  0x16   :  { %v42_v14 = vsub.s32 %v39_v10, %v41_v8  ;;  %v147_v17 = vsel %vm126_vm0, %v401_v0, -inf  ;;  %v154_v19 = vsel %vm126_vm0, %v406_v1, -inf  ;;  %v190_v27 = vand.u32 127, %v40_v2  ;;  %s368_s1 = smov [#allocation4]   ;;  %s369_s28 = smov [#allocation6]  }
  0x17   :  { %v148_v18 = vrot.slane %v147_v17, 4  ;;  %283 = vpow2.f32 %v69_v15  ;;  %v155_v22 = vrot.slane %v154_v19, 4  ;;  %p194_p5 = scmp.lt.s32.totalorder %s193_s25, 16  ;;  %p201_p6 = scmp.lt.s32.totalorder %s272_s26, 16  ;;  %v367_v38 = vmov 0.0  }
  0x18   :  { %v43_v20 = vrot.slane %v268_v3, %v42_v14  ;;  %v50_v21 = vrot.slane %v36_v9, %v42_v14  ;;  %285 = vpow2.f32 %v71_v16  ;;  %vm207_vm2 = vcmask 1040384   ;;  %s246_s2 = sshll.u32 %s368_s1, 4  ;;  %s256_s29 = sshll.u32 %s369_s28, 4  ;;  %s247_s2 = int_to_ptr.vmem [resolvable:$true] %s246_s2  ;;  %s257_s29 = int_to_ptr.vmem [resolvable:$true] %s256_s29 }
  0x19   :  { %v149_v23 = vmax.f32 %v147_v17, %v148_v18  ;;  %v156_v26 = vmax.f32 %v154_v19, %v155_v22  ;;  %s474_s25 = smov (!%p194_p5, %s193_s25), 16  ;;  %s476_s26 = smov (!%p201_p6, %s272_s26), 16  ;;  %v83_v51 = vrot.slane %v26_v4, 2  ;;  %v84_v55 = vrot.slane %v27_v5, 2 }
  0x1a   :  { %v54_v24 = vrot.slane %v43_v20, %v53_v13  ;;  %v58_v25 = vrot.slane %v50_v21, %v53_v13  ;;  %v196_v33 = vstv %s474_s25  ;;  %v203_v40 = vstv %s476_s26  ;;  %s315_s30 = scalar_lea.vmem %s247_s2, 128  ;;  %p320_p8 = scmp.lt.s32.totalorder %s247_s2, %s247_s2 }
  0x1b   :  { %v150_v28 = vrot.slane %v149_v23, 2  ;;  %v157_v31 = vrot.slane %v156_v26, 2  ;;  %vm197_vm1 = vcmp.lt.s32.totalorder %v190_v27, %v196_v33  ;;  %vm204_vm3 = vcmp.lt.s32.totalorder %v190_v27, %v203_v40  ;;  %p316_p7 = scmp.ne.s32.totalorder %s247_s2, %s315_s30  ;;  %p321_p9 = scmp.lt.s32.totalorder %s315_s30, %s315_s30 }
  0x1c   :  { %v61_v29 = vsub.f32 %v54_v24, %v401_v0  ;;  %v62_v30 = vsub.f32 %v58_v25, %v406_v1  ;;  %v271_v39 = vsel %vm197_vm1, 1.0, %v367_v38  ;;  %v273_v44 = vsel %vm204_vm3, 1.0, %v367_v38 }
  0x1d   :  { %v151_v32 = vmax.f32 %v149_v23, %v150_v28  ;;  %v158_v36 = vmax.f32 %v156_v26, %v157_v31  ;;  %v423_v48 = vsel %vm207_vm2, %v271_v39, %v273_v44  ;;  %v93_v61 = vrot.slane %v401_v0, 6  ;;  %p322_p10 = por %p321_p9, %p320_p8 }
  0x1e   :  { %v63_v34 = vmul.f32 -0.5, %v61_v29  ;;  %v64_v35 = vmul.f32 -0.5, %v62_v30  ;;  %v429_v53 = vsel %vm126_vm0, %v423_v48, 0.0  ;;  %v94_v2 = vrot.slane %v406_v1, 6 }
  0x1f   :  { %v152_v37 = vrot.slane %v151_v32, 1  ;;  %v159_v41 = vrot.slane %v158_v36, 1  ;;  %vm99_vm4 = vcmask 125954   ;;  %vm212_vm5 = vcmask 1041409   ;;  %p323_p11 = pnand %p322_p10, %p316_p7 }
  0x20   :  { %v65_v42 = vmul.f32 %v63_v34, %v61_v29  ;;  %v66_v46 = vmul.f32 %v64_v35, %v62_v30  ;;  %vm209_vm6 = vcmp.gt.f32.partialorder %v423_v48, 0.0 }
  0x21   :  { %v419_v43 = vmax.f32 %v151_v32, %v152_v37  ;;  %v284_v45 = vpop.eup %283  ;;  %v421_v47 = vmax.f32 %v158_v36, %v159_v41 }
  0x22   :  { %v286_v49 = vpop.eup %285  ;;  %v75_v50 = vrot.slane %v284_v45, 2 }
  0x23   :  { %v161_v52 = vsub.f32 %v401_v0, %v419_v43  ;;  %v76_v54 = vrot.slane %v286_v49, 2  ;;  %v162_v56 = vsub.f32 %v406_v1, %v421_v47 }
  0x24   :  { %v79_v57 = vmul.f32 %v75_v50, %v65_v42 }
  0x25   :  { %v80_v58 = vmul.f32 %v76_v54, %v66_v46  ;;  %v163_v59 = vmul.f32 1.442695, %v161_v52  ;;  %v165_v62 = vmul.f32 1.442695, %v162_v56 }
  0x26   :  { %v87_v60 = vsub.f32 %v79_v57, %v83_v51 }
  0x27   :  { %v88_v63 = vsub.f32 %v80_v58, %v84_v55  ;;  %287 = vpow2.f32 %v163_v59 }
  0x28   :  { %v269_v3 = vadd.f32 -0.9189385, %v87_v60  ;;  %289 = vpow2.f32 %v165_v62 }
  0x29   :  { %v270_v4 = vadd.f32 -0.9189385, %v88_v63 }
  0x2a   :  { %v97_v6 = vadd.f32 %v269_v3, %v93_v61 }
  0x2b   :  { %v98_v5 = vadd.f32 %v270_v4, %v94_v2 }
  0x2c   :  { %v100_v7 = vsel %vm99_vm4, %v97_v6, -inf }
  0x2d   :  { %v101_v8 = vrot.slane %v100_v7, 4  ;;  %v107_v9 = vsel %vm99_vm4, %v98_v5, -inf }
  0x2e   :  { %v108_v10 = vrot.slane %v107_v9, 4 }
  0x2f   :  { %v102_v11 = vmax.f32 %v100_v7, %v101_v8 }
  0x30   :  { %v109_v12 = vmax.f32 %v107_v9, %v108_v10 }
  0x31   :  { %v103_v13 = vrot.slane %v102_v11, 2  ;;  %v288_v0 = vpop.eup %287 }
  0x32   :  { %v110_v14 = vrot.slane %v109_v12, 2  ;;  %v290_v16 = vpop.eup %289  ;;  %v167_v19 = vsel %vm126_vm0, %v288_v0, 0.0 }
  0x33   :  { %v104_v15 = vmax.f32 %v102_v11, %v103_v13  ;;  %v174_v21 = vsel %vm126_vm0, %v290_v16, 0.0  ;;  %v168_v24 = vrot.slane %v167_v19, 4 }
  0x34   :  { %v111_v17 = vmax.f32 %v109_v12, %v110_v14  ;;  %v175_v26 = vrot.slane %v174_v21, 4 }
  0x35   :  { %v105_v1 = vrot.slane %v104_v15, 1  ;;  %v169_v29 = vadd.f32 %v168_v24, %v167_v19 }
  0x36   :  { %v112_v18 = vrot.slane %v111_v17, 1  ;;  %v176_v30 = vadd.f32 %v175_v26, %v174_v21 }
  0x37   :  { %v106_v20 = vmax.f32 %v104_v15, %v105_v1  ;;  %v170_v31 = vrot.slane %v169_v29, 2 }
  0x38   :  { %v113_v22 = vmax.f32 %v111_v17, %v112_v18  ;;  %v177_v32 = vrot.slane %v176_v30, 2 }
  0x39   :  { %v114_v23 = vsub.f32 %v97_v6, %v106_v20  ;;  %v171_v33 = vadd.f32 %v170_v31, %v169_v29 }
  0x3a   :  { %v115_v25 = vsub.f32 %v98_v5, %v113_v22  ;;  %v178_v34 = vadd.f32 %v177_v32, %v176_v30 }
  0x3b   :  { %v116_v27 = vmul.f32 1.442695, %v114_v23  ;;  %v172_v39 = vrot.slane %v171_v33, 1 }
  0x3c   :  { %v118_v28 = vmul.f32 1.442695, %v115_v25  ;;  %v179_v41 = vrot.slane %v178_v34, 1 }
  0x3d   :  { %291 = vpow2.f32 %v116_v27  ;;  %v173_v49 = vadd.f32 %v172_v39, %v171_v33 }
  0x3e   :  { %293 = vpow2.f32 %v118_v28  ;;  %v180_v51 = vadd.f32 %v179_v41, %v178_v34 }
  0x3f   :  { %295 = vlog2.f32 %v173_v49 }
  0x40   :  { %297 = vlog2.f32 %v180_v51 }
  0x47   :  { %v292_v35 = vpop.eup %291 }
  0x48   :  { %v294_v36 = vpop.eup %293  ;;  %v122_v37 = vrot.slane %v292_v35, 2 }
  0x49   :  { %v123_v38 = vrot.slane %v294_v36, 2  ;;  %v296_v61 = vpop.eup %295 }
  0x4a   :  { %v127_v40 = vsel %vm126_vm0, %v122_v37, 0.0  ;;  %v298_v62 = vpop.eup %297  ;;  %v182_v63 = vmul.f32 0.6931472, %v296_v61 }
  0x4b   :  { %v128_v42 = vrot.slane %v127_v40, 4  ;;  %v134_v44 = vsel %vm126_vm0, %v123_v38, 0.0  ;;  %v184_v2 = vmul.f32 0.6931472, %v298_v62 }
  0x4c   :  { %v135_v45 = vrot.slane %v134_v44, 4  ;;  %v185_v5 = vadd.f32 %v182_v63, %v419_v43 }
  0x4d   :  { %v129_v46 = vadd.f32 %v128_v42, %v127_v40  ;;  %v186_v8 = vadd.f32 %v184_v2, %v421_v47 }
  0x4e   :  { %v136_v50 = vadd.f32 %v135_v45, %v134_v44 }
  0x4f   :  { %v130_v52 = vrot.slane %v129_v46, 2 }
  0x50   :  { %v137_v54 = vrot.slane %v136_v50, 2 }
  0x51   :  { %v131_v55 = vadd.f32 %v130_v52, %v129_v46 }
  0x52   :  { %v138_v56 = vadd.f32 %v137_v54, %v136_v50 }
  0x53   :  { %v132_v57 = vrot.slane %v131_v55, 1 }
  0x54   :  { %v139_v58 = vrot.slane %v138_v56, 1 }
  0x55   :  { %v133_v59 = vadd.f32 %v132_v57, %v131_v55 }
  0x56   :  { %v140_v60 = vadd.f32 %v139_v58, %v138_v56 }
  0x57   :  { %299 = vlog2.f32 %v133_v59 }
  0x58   :  { %301 = vlog2.f32 %v140_v60 }
  0x61   :  { %v300_v3 = vpop.eup %299 }
  0x62   :  { %v302_v4 = vpop.eup %301  ;;  %v142_v6 = vmul.f32 0.6931472, %v300_v3 }
  0x63   :  { %v144_v7 = vmul.f32 0.6931472, %v302_v4 }
  0x64   :  { %v145_v9 = vadd.f32 %v142_v6, %v106_v20 }
  0x65   :  { %v146_v10 = vadd.f32 %v144_v7, %v113_v22 }
  0x66   :  { %v187_v11 = vsub.f32 %v185_v5, %v145_v9 }
  0x67   :  { %v188_v12 = vsub.f32 %v186_v8, %v146_v10 }
  0x69   :  { %v213_v13 = vsel %vm212_vm5, %v188_v12, %v187_v11 }
  0x6a   :  { %v215_v14 = vsel %vm209_vm6, %v213_v13, 0.0 }
  0x6b   :  { %v216_v0 = vsel %vm126_vm0, %v215_v14, 0.0 }
  0x6c   :  { %217 = vadd.xlane.f32.xlu0 %v216_v0 }
  0x70   :  { %227 = vadd.xlane.f32.xlu0 %v429_v53 }
  0xf9   :  { %v218_v15 = vpop.xlane.xlu0 %217 }
  0xfa   :  { %v219_v16 = vrot.slane %v218_v15, 4 }
  0xfc   :  { %v220_v43 = vadd.f32 %v219_v16, %v218_v15 }
  0xfd   :  { %v228_v17 = vpop.xlane.xlu0 %227 }
  0xfe   :  { %v221_v1 = vrot.slane %v220_v43, 2  ;;  %v229_v47 = vrot.slane %v228_v17, 4 }
 0x100   :  { %v230_v18 = vadd.f32 %v229_v47, %v228_v17  ;;  %v222_v19 = vadd.f32 %v221_v1, %v220_v43 }
 0x102   :  { %v231_v20 = vrot.slane %v230_v18, 2  ;;  %v223_v21 = vrot.slane %v222_v19, 1 }
 0x104   :  { %v232_v22 = vadd.f32 %v231_v20, %v230_v18  ;;  %v224_v23 = vadd.f32 %v223_v21, %v222_v19 }
 0x106   :  { %274 = vpush %v224_v23  ;;  %v233_v48 = vrot.slane %v232_v22, 1 }
 0x108   :  { %v234_v24 = vadd.f32 %v233_v48, %v232_v22 }
 0x10a   :  { %276 = vpush %v234_v24 }
 0x137   :  { %s275_s27 = spop %274 }
 0x138   :  { %v236_v53 = vstv %s275_s27 }
 0x139   :  { %237 = vst [vmem:[#allocation4] sm:$0xff] %v236_v53 }
 0x13a   :  { %326 = shalt.err (!%p323_p11)
}
 0x13b   :  { %s327_s7 = scalar_lea.hbm %s471_s3, 128 }
 0x13c   :  { %p328_p12 = scmp.ne.s32.totalorder %s471_s3, %s327_s7  ;;  %p331_p13 = scmp.lt.u32.totalorder %s327_s7, %s471_s3 }
 0x13e   :  { %p333_p0 = pnand %p331_p13, %p328_p12 }
 0x140   :  { %336 = shalt.err (!%p333_p0)
}
 0x141   :  { %249 = dma.vmem_to_hbm [thread:$0]  %s247_s2, 128, %s471_s3, [#allocation5]  }
 0x142   :  { %s277_s14 = spop %276  ;;  %s337_s15 = scalar_lea.vmem %s257_s29, 128 }
 0x143   :  { %v238_v25 = vstv %s277_s14  ;;  %p338_p1 = scmp.ne.s32.totalorder %s257_s29, %s337_s15  ;;  %p342_p2 = scmp.lt.s32.totalorder %s257_s29, %s257_s29 }
 0x144   :  { %239 = vst [vmem:[#allocation6] sm:$0xff] %v238_v25  ;;  %p343_p3 = scmp.lt.s32.totalorder %s337_s15, %s337_s15 }
 0x146   :  { %p344_p4 = por %p343_p3, %p342_p2 }
 0x148   :  { %p345_p5 = pnand %p344_p4, %p338_p1 }
 0x14a   :  { %348 = shalt.err (!%p345_p5)
}
 0x14b   :  { %s349_s18 = scalar_lea.hbm %s472_s4, 128 }
 0x14c   :  { %p350_p6 = scmp.ne.s32.totalorder %s472_s4, %s349_s18  ;;  %p353_p7 = scmp.lt.u32.totalorder %s349_s18, %s472_s4 }
 0x14e   :  { %p355_p8 = pnand %p353_p7, %p350_p6 }
 0x150   :  { %358 = shalt.err (!%p355_p8)
}
 0x151   :  { %259 = dma.vmem_to_hbm [thread:$0]  %s257_s29, 128, %s472_s4, [#allocation7]  }
 0x152   :  { %361 = dma.done.wait [#allocation5], 128  }
 0x153   :  { %362 = vsyncadd [#allocation5], 4294967168 }
 0x154   :  { %363 = dma.done.wait [#allocation7], 128  }
 0x155   :  { %364 = vsyncadd [#allocation7], 4294967168 }
 0x156   :  { %266 = vsyncpa [#allocation5], 1 }
 0x157   :  { %267 = vsyncpa [#allocation7], 1 }

</bundles_post_ra>
